<compile_context>
chip_gen: v5e
topology: v5e:2x2
jax: 0.10.0
libtpu: 0.0.40
codegen_flags: <defaults>
</compile_context>

<pallas_src>
import jax
import jax.numpy as jnp
from jax.experimental import pallas as pl
from jax.experimental.pallas import tpu as pltpu


def _round_up(x: int, m: int) -> int:
    return (x + m - 1) // m * m


def _masked_conv1d_kernel(x_ref, w_ref, b_ref, m_ref, o_ref):
    # x_ref : (K*C_in, T_TILE)   im2col'ed input taps for this (batch, time-tile)
    # w_ref : (C_out, K*C_in)    im2col'ed conv weight (input dtype)
    # b_ref : (C_out, 1)         bias, f32, broadcast over lanes (time)
    # m_ref : (1, T_TILE)        downsampled float mask tile
    # o_ref : (C_out, T_TILE)    masked conv output tile
    acc = jnp.dot(w_ref[...], x_ref[...], preferred_element_type=jnp.float32)
    acc = acc + b_ref[...]                      # (C_out, 1) broadcast over time
    acc = acc * m_ref[...].astype(jnp.float32)  # (1, T_TILE) broadcast over C_out
    o_ref[...] = acc.astype(o_ref.dtype)


def masked_conv1d(x, mask, weight, bias, *, stride: int = 1, t_tile: int = 512):
    """Pallas implementation of MaskedConv1D.forward.

    x:      (B, C_in, T)       float (f32 or bf16)
    mask:   (B, 1, T)          bool
    weight: (C_out, C_in, K)   K odd; padding = K // 2 (module assert)
    bias:   (C_out,)
    Returns (out_conv (B, C_out, T//stride), out_mask (B, 1, T//stride) bool)
    """
    B, C_in, T = x.shape
    C_out, C_in_w, K = weight.shape
    assert C_in_w == C_in
    assert K % 2 == 1
    assert T % stride == 0
    pad = K // 2
    T_out = T // stride

    # Lane-dense time tiling: T_TILE is a multiple of 128; output time is padded
    # up to a multiple of T_TILE (padded tail is masked to zero and sliced off).
    T_TILE = min(t_tile, _round_up(T_out, 128))
    T_out_p = _round_up(T_out, T_TILE)
    NT = T_out_p // T_TILE

    # Zero-pad time: K//2 halo on each side plus a right extension so that every
    # output position in [0, T_out_p) reads a valid (zero) window.
    right_pad = pad + (T_out_p - T_out) * stride
    x_pad = jnp.pad(x, ((0, 0), (0, 0), (pad, right_pad)))

    # im2col input: stack the K stride-shifted tap views along channels so the
    # kernel does a single (C_out, K*C_in) @ (K*C_in, T_TILE) contraction.
    taps = [
        jax.lax.slice(
            x_pad,
            (0, 0, k),
            (B, C_in, k + (T_out_p - 1) * stride + 1),
            (1, 1, stride),
        )
        for k in range(K)
    ]
    x_taps = jnp.concatenate(taps, axis=1)  # (B, K*C_in, T_out_p)

    # im2col weight: w2[o, k*C_in + i] = weight[o, i, k].  Keep it in the input
    # dtype (no f32 upcast) so the MXU runs its native bf16 path when x is bf16.
    w2 = jnp.transpose(weight, (0, 2, 1)).reshape(C_out, K * C_in).astype(x.dtype)
    bias2 = bias.reshape(C_out, 1).astype(jnp.float32)

    # Mask: nearest-neighbour downsample (F.interpolate 'nearest' == [::stride]),
    # padded to the lane-dense output length.
    mask_f = mask.astype(x.dtype)
    mask_out = mask_f[:, :, ::stride] if stride > 1 else mask_f  # (B, 1, T_out)
    mask_out_p = jnp.pad(mask_out, ((0, 0), (0, 0), (0, T_out_p - T_out)))

    out = pl.pallas_call(
        _masked_conv1d_kernel,
        out_shape=jax.ShapeDtypeStruct((B, C_out, T_out_p), x.dtype),
        grid_spec=pltpu.PrefetchScalarGridSpec(
            num_scalar_prefetch=0,
            grid=(B, NT),
            in_specs=[
                # batch dim squeezed out of every kernel ref (None == pl.Squeezed)
                pl.BlockSpec((None, K * C_in, T_TILE), lambda b, t: (b, 0, t)),
                pl.BlockSpec((C_out, K * C_in), lambda b, t: (0, 0)),
                pl.BlockSpec((C_out, 1), lambda b, t: (0, 0)),
                pl.BlockSpec((None, 1, T_TILE), lambda b, t: (b, 0, t)),
            ],
            out_specs=pl.BlockSpec((None, C_out, T_TILE), lambda b, t: (b, 0, t)),
        ),
        compiler_params=pltpu.CompilerParams(
            dimension_semantics=("parallel", "parallel"),
            vmem_limit_bytes=32 * 1024 * 1024,
        ),
    )(x_taps, w2, bias2, mask_out_p)

    out_conv = out[:, :, :T_out]
    out_mask = mask_out != 0
    return out_conv, out_mask


def _reference(x, mask, weight, bias, *, stride):
    """Pure-JAX reference matching the PyTorch module semantics."""
    K = weight.shape[-1]
    pad = K // 2
    out = jax.lax.conv_general_dilated(
        x, weight,
        window_strides=(stride,),
        padding=[(pad, pad)],
        dimension_numbers=("NCH", "OIH", "NCH"),
    ) + bias[None, :, None]
    mask_f = mask.astype(x.dtype)
    if stride > 1:
        mask_f = mask_f[:, :, ::stride]
    return out * mask_f, mask_f != 0


if __name__ == "__main__":
    # Small shapes: B=2, C_in=4, C_out=8, T=16, kernel_size=3 (padding=1).
    key = jax.random.PRNGKey(0)
    k_x, k_w, k_b = jax.random.split(key, 3)

    B, C_in, C_out, T, K = 2, 4, 8, 16, 3

    x = jax.random.normal(k_x, (B, C_in, T), dtype=jnp.float32)
    weight = 0.1 * jax.random.normal(k_w, (C_out, C_in, K), dtype=jnp.float32)
    # Module init sets bias to 0; use a nonzero bias here to exercise the path.
    bias = 0.05 * jax.random.normal(k_b, (C_out,), dtype=jnp.float32)
    # Mask: valid prefix of length 12 / 16 per batch element.
    lengths = jnp.array([12, 16])
    mask = jnp.arange(T)[None, None, :] < lengths[:, None, None]  # (B, 1, T) bool

    ok = True
    for stride in (1, 2):
        out_conv, out_mask = masked_conv1d(x, mask, weight, bias, stride=stride)
        out_conv = jax.block_until_ready(out_conv)
        out_mask = jax.block_until_ready(out_mask)

        ref_conv, ref_mask = _reference(x, mask, weight, bias, stride=stride)

        assert out_conv.shape == (B, C_out, T // stride)
        assert out_mask.shape == (B, 1, T // stride)
        assert out_mask.dtype == jnp.bool_
        ok &= bool(jnp.allclose(out_conv, ref_conv, atol=1e-4, rtol=1e-4))
        ok &= bool(jnp.array_equal(out_mask, ref_mask))

    assert ok
    print("KERNEL_OK")
</pallas_src>

<mosaic_0001>
module attributes {stable_mosaic.version = 11 : i64} {
  func.func @_masked_conv1d_kernel(%arg0: i32, %arg1: i32, %arg2: memref<1x12x128xf32, #tpu.memory_space<vmem>>, %arg3: memref<8x12xf32, #tpu.memory_space<vmem>>, %arg4: memref<8x1xf32, #tpu.memory_space<vmem>>, %arg5: memref<1x1x128xf32, #tpu.memory_space<vmem>>, %arg6: memref<1x8x128xf32, #tpu.memory_space<vmem>>) attributes {dimension_semantics = [#tpu.dimension_semantics<parallel>, #tpu.dimension_semantics<parallel>], iteration_bounds = array<i64: 2, 1>, scalar_prefetch = 0 : i64, scratch_operands = 0 : i64, tpu.core_type = #tpu.core_type<tc>, window_params = [{transform_indices = @transform_0, window_bounds = array<i64: 1, 12, 128>}, {pipeline_mode = #tpu.pipeline_mode<synchronous>, transform_indices = @transform_1, window_bounds = array<i64: 8, 12>}, {pipeline_mode = #tpu.pipeline_mode<synchronous>, transform_indices = @transform_2, window_bounds = array<i64: 8, 1>}, {transform_indices = @transform_3, window_bounds = array<i64: 1, 1, 128>}, {transform_indices = @transform_4, window_bounds = array<i64: 1, 8, 128>}]} {
    %c0 = arith.constant 0 : index
    %c0_0 = arith.constant 0 : index
    %0 = vector.load %arg3[%c0, %c0_0] : memref<8x12xf32, #tpu.memory_space<vmem>>, vector<8x12xf32>
    %c0_1 = arith.constant 0 : index
    %c0_2 = arith.constant 0 : index
    %c0_3 = arith.constant 0 : index
    %1 = vector.load %arg2[%c0_1, %c0_2, %c0_3] : memref<1x12x128xf32, #tpu.memory_space<vmem>>, vector<1x12x128xf32>
    %2 = vector.shape_cast %1 : vector<1x12x128xf32> to vector<12x128xf32>
    %cst = arith.constant dense<0.000000e+00> : vector<8x128xf32>
    %3 = tpu.matmul %0, %2, %cst {dimension_numbers = #tpu.dot_dimension_numbers<[1], [0], [0], [1], [0, 0, 1, 1], [], []>} : vector<8x12xf32>, vector<12x128xf32>, vector<8x128xf32> -> vector<8x128xf32>
    %c0_4 = arith.constant 0 : index
    %c0_5 = arith.constant 0 : index
    %4 = vector.load %arg4[%c0_4, %c0_5] : memref<8x1xf32, #tpu.memory_space<vmem>>, vector<8x1xf32>
    %5 = vector.broadcast %4 : vector<8x1xf32> to vector<8x128xf32>
    %6 = arith.addf %3, %5 : vector<8x128xf32>
    %c0_6 = arith.constant 0 : index
    %c0_7 = arith.constant 0 : index
    %c0_8 = arith.constant 0 : index
    %7 = vector.load %arg5[%c0_6, %c0_7, %c0_8] : memref<1x1x128xf32, #tpu.memory_space<vmem>>, vector<1x1x128xf32>
    %8 = vector.shape_cast %7 : vector<1x1x128xf32> to vector<1x128xf32>
    %9 = vector.broadcast %8 : vector<1x128xf32> to vector<8x128xf32>
    %10 = arith.mulf %6, %9 : vector<8x128xf32>
    %c0_9 = arith.constant 0 : index
    %c0_10 = arith.constant 0 : index
    %c0_11 = arith.constant 0 : index
    %11 = vector.load %arg6[%c0_9, %c0_10, %c0_11] : memref<1x8x128xf32, #tpu.memory_space<vmem>>, vector<1x8x128xf32>
    %12 = vector.shape_cast %11 : vector<1x8x128xf32> to vector<8x128xf32>
    %13 = vector.shape_cast %10 : vector<8x128xf32> to vector<1x8x128xf32>
    tpu.vector_store %arg6[%c0_9, %c0_10, %c0_11], %13 {strides = array<i32>} : memref<1x8x128xf32, #tpu.memory_space<vmem>>, vector<1x8x128xf32>,
    return
  }
  func.func @transform_0(%arg0: i32, %arg1: i32) -> (i32, i32, i32) {
    %c0_i32 = arith.constant 0 : i32
    %c0_i32_0 = arith.constant 0 : i32
    return %arg0, %c0_i32, %arg1 : i32, i32, i32
  }
  func.func @transform_1(%arg0: i32, %arg1: i32) -> (i32, i32) {
    %c0_i32 = arith.constant 0 : i32
    %c0_i32_0 = arith.constant 0 : i32
    %c0_i32_1 = arith.constant 0 : i32
    return %c0_i32, %c0_i32_0 : i32, i32
  }
  func.func @transform_2(%arg0: i32, %arg1: i32) -> (i32, i32) {
    %c0_i32 = arith.constant 0 : i32
    %c0_i32_0 = arith.constant 0 : i32
    %c0_i32_1 = arith.constant 0 : i32
    return %c0_i32, %c0_i32_0 : i32, i32
  }
  func.func @transform_3(%arg0: i32, %arg1: i32) -> (i32, i32, i32) {
    %c0_i32 = arith.constant 0 : i32
    %c0_i32_0 = arith.constant 0 : i32
    return %arg0, %c0_i32, %arg1 : i32, i32, i32
  }
  func.func @transform_4(%arg0: i32, %arg1: i32) -> (i32, i32, i32) {
    %c0_i32 = arith.constant 0 : i32
    %c0_i32_0 = arith.constant 0 : i32
    return %arg0, %c0_i32, %arg1 : i32, i32, i32
  }
}

</mosaic_0001>

<bundles_post_ra>
// kernel: tpu_custom_call.1
= control target key start
LH: loop header
LB: loop body
LE: loop exit
PB: predicated region body
PF: predicated region fallthrough
CT: control target
= control target key end

     0   :  { %9 = vsyncpa [#allocation3], 0  ;;  %s677_s0 = inlined_call_operand.vmem [shape: f32[2,12,128], index: 0, kind: input, shape index: {}]   ;;  %s678_s1 = inlined_call_operand.vmem [shape: f32[8,12], index: 1, kind: input, shape index: {}]   ;;  %s679_s2 = inlined_call_operand.vmem [shape: f32[8,1], index: 2, kind: input, shape index: {}]   ;;  %s680_s3 = inlined_call_operand.vmem [shape: f32[2,1,128], index: 3, kind: input, shape index: {}]   ;;  %s681_s4 = inlined_call_operand.hbm [shape: f32[2,8,128], index: 4, kind: output, shape index: {}]  }
   0x1   :  { %11 = vsyncpa [#allocation3 + $0x1], 0  ;;  %s571_s15 = smov 0   ;;  %s573_s16 = smov 0  }
   0x2   :  { %s575_s17 = smov 0   ;;  %s577_s18 = smov 0  }
   0x3   :  { %s579_s19 = smov 0   ;;  %s581_s20 = smov 0  }
   0x4 LB: > { %s392_s21 = sadd.s32 4294967295, %s543_s20   ;;  %s393_s22 = sadd.s32 4294967294, %s543_s20   ;;  %s543_s20 = sphi %s581_s20, %s17_s20   ;;  %s539_s19 = sphi %s579_s19, %s688_s19   ;;  %s535_s18 = sphi %s577_s18, %s687_s18   ;;  %s531_s17 = sphi %s575_s17, %s686_s17   ;;  %s527_s16 = sphi %s573_s16, %s685_s16   ;;  %s523_s15 = sphi %s571_s15, %s684_s15  }
   0x5   : > { %s29_s23 = sadd.s32 1, %s539_s19  ;;  %s136_s24 = sadd.s32 1, %s531_s17 }
   0x6   : > { %p31_p0 = scmp.ge.s32.totalorder %s29_s23, 2  ;;  %p146_p1 = scmp.ne.s32.totalorder %s531_s17, %s527_s16 }
   0x7   : > { %p147_p2 = scmp.eq.s32.totalorder %s392_s21, 1  ;;  %p152_p3 = scmp.ne.s32.totalorder %s527_s16, %s523_s15 }
   0x8   : > { %s690_s23 = smov (%p31_p0, %s29_s23), 0  ;;  %p153_p5 = scmp.eq.s32.totalorder %s393_s22, 1 }
   0x9   : > { %p611_p4 = por %p147_p2, %p146_p1  ;;  %s131_s26 = ssub.s32 %s539_s19, %s690_s23 }
   0xa   : > { %p396_p6 = scmp.ge.s32.totalorder %s543_s20, 1  ;;  %p134_p7 = scmp.eq.s32.totalorder %s131_s26, 0 }
   0xb   : > { %p618_p8 = por %p153_p5, %p152_p3  ;;  %p197_p9 = scmp.lt.s32.totalorder %s543_s20, 3 }
   0xc   : > { %s624_s28 = scalar_select %p134_p7, %s531_s17, %s136_s24  }
   0xd   : > { %p198_p10 = pnand %p396_p6, %p197_p9 }
   0xe   : > { %p232_p11 = scmp.lt.s32.totalorder (!%p198_p10), %s535_s18, 1  ;;  %s229_s21 = sand.u32 (!%p198_p10), 1, %s527_s16  }
   0xf   : > { %201 = sbr.rel (%p198_p10) target bundleno = 161 (0xa1), region = 36  ;;  %s397_s22 = sshll.u32 (!%p198_p10), %s229_s21, 3 }
  0x10   : > { %s403_s24 = sshll.u32 (!%p198_p10), %s535_s18, 3  ;;  %s290_s8 = scalar_lea.sflag (!%p198_p10), [#allocation3], %s229_s21 }
  0x11   : > { %s301_s30 = scalar_lea.hbm (!%p198_p10), %s681_s4, %s403_s24 }
  0x12   : > { %s305_s7 = sshll.u32 (!%p198_p10), %s301_s30, 4  ;;  %s306_s7 = int_to_ptr.hbm [resolvable:$true] %s305_s7 }
  0x13   : > { %s479_s10 = sshra.s32 (!%p198_p10), %s306_s7, 4  ;;  %s480_s10 = int_to_ptr.hbm [resolvable:$true] %s479_s10 }
  0x14   : > { %v249_v0 = vld [vmem:[%s679_s2] sm:$0xff]  ;;  %v545_v1 = vmov 0   ;;  %s233_s5 = scalar_select %p232_p11, %s535_s18, 1  ;;  %vm259_vm0 = vcmask 1043456   ;;  %vm255_vm1 = vcmask 97280  }
  0x15   : > { %463 = vset.pattern.permute.xlu0 %v545_v1  ;;  %v246_v4 = vld [vmem:[%s678_s1] sm:$0xff]  ;;  %s481_s18 = scalar_lea.hbm %s480_s10, 8  ;;  %p486_p1 = scmp.lt.s32.totalorder %s480_s10, %s681_s4 }
  0x16   : > { %252 = vperm.xlu0 %463, %v249_v0   ;;  %s406_s6 = sshll.u32 %s233_s5, 4  ;;  %s245_s9 = scalar_lea.vmem %s680_s3, %s233_s5 }
  0x17   : > { %s239_s12 = scalar_lea.vmem %s677_s0, %s406_s6  ;;  %v464_v6 = vld [vmem:[%s245_s9] ss:$0 sm:$0xff]  ;;  %s231_s5 = scalar_lea.vmem [#allocation2], %s397_s22 }
  0x18   : > { %v248_v2 = vld [vmem:[%s239_s12 + $0x8] sm:$0xf]  ;;  %v247_v3 = vld [vmem:[%s239_s12] sm:$0xff]  ;;  %s303_s6 = sshll.u32 %s231_s5, 4  ;;  %p482_p12 = scmp.ne.s32.totalorder %s480_s10, %s481_s18  ;;  %s304_s6 = int_to_ptr.vmem [resolvable:$true] %s303_s6 }
  0x19   : > { %400 = vmatpush.msk.msra.mxu0 %vm259_vm0, %v248_v2  ;;  %s485_s9 = scalar_lea.hbm %s681_s4, 16 }
  0x1a   : > { %p483_p13 = pnand %p482_p12, %p611_p4  ;;  %p487_p2 = scmp.lt.s32.totalorder %s485_s9, %s481_s18 }
  0x1b   : > { %278 = vmatpush.msra.mxu0 %v247_v3 }
  0x1c   : > { %401 = vmatmul.msk.f32.vlgmr.msra.gmra.mxu0 %vm255_vm1, %v246_v4  ;;  %p484_p0 = pneg %p483_p13  ;;  %p488_p3 = por %p487_p2, %p486_p1 }
  0x1e   : > { %p489_p5 = pnand %p488_p3, %p484_p0 }
  0x88   : > { %v253_v5 = vpop.permute.xlu0 %252 }
  0x99   : > { %v280_v7 = vpop.f32.mrf.mxu0 }
  0x9a   : > { %v281_v8 = vadd.f32 %v280_v7, %v253_v5 }
  0x9c   : > { %v287_v9 = vmul.f32 %v464_v6, %v281_v8 }
  0x9e   : > { %288 = vst [vmem:[%s231_s5] sm:$0xff] %v287_v9 }
  0x9f   : > { %492 = shalt.err (!%p489_p5)
}
  0xa0   : > { %407 = dma.vmem_to_hbm [thread:$0]  (%p611_p4), %s304_s6, 128, %s306_s7, %s290_s8  }
  0xa1 PF: > { %p413_p6 = scmp.ge.s32.totalorder %s543_s20, 2  ;;  %s317_s21 = sand.u32 1, %s523_s15  }
  0xa2   : > { %s318_s22 = scalar_lea.sflag [#allocation3], %s317_s21 }
  0xa3   : > { %p410_p7 = pnand %p413_p6, %p618_p8 }
  0xa5   : > { %p411_p9 = pneg %p410_p7 }
  0xa7   : > { %518 = dma.done.wait (%p411_p9), %s318_s22, 128  }
  0xa8   : > { %520 = vsyncadd (%p411_p9), %s318_s22, 4294967168  ;;  %s17_s20 = sadd.s32 1, %s543_s20   ;;  %s684_s15 = smov %s527_s16 }
  0xa9   : > { %p14_p10 = scmp.ge.s32.totalorder %s17_s20, 4   ;;  %s685_s16 = smov %s531_s17 }
  0xaa   : > { %s686_s17 = smov %s624_s28  ;;  %s687_s18 = smov %s539_s19 }
  0xab   : > { %s688_s19 = smov %s690_s23  ;;  %16 = sbr.rel (!%p14_p10) target bundleno = 4 (0x4), region = 74 }
  0xb0   :  { %324 = vsyncpa [#allocation3], 1 }
  0xb1   :  { %326 = vsyncpa [#allocation3 + $0x1], 1 }

</bundles_post_ra>
